<compile_context>
chip_gen: v7x
topology: tpu7x:2x2x1
jax: 0.10.0
libtpu: 0.0.40
codegen_flags: <defaults>
</compile_context>

<pallas_src>
import functools

import numpy as np
import jax
import jax.numpy as jnp
from jax import lax
from jax.experimental import pallas as pl
from jax.experimental.pallas import tpu as pltpu

_LANES = 128
_SUBLANES = 8
_LOG2 = float(np.log(2.0))

# 1-D reduction grid over rows -> reduction axis must be "arbitrary".
_PARAMS = pltpu.CompilerParams(dimension_semantics=("arbitrary",))


# ----------------------------------------------------------------------------
# Tiling helpers (wrapper-side glue: padding / lane packing only)
# ----------------------------------------------------------------------------
def _round_up(x, m):
    return ((x + m - 1) // m) * m


def _row_tiling(n_rows, row_bytes, block_rows=None, max_rows=4096):
    """Pick a row-block (multiple of 8, or == padded row count) and padded rows.

    Targets ~2 MiB per double-buffered input so that 2-3 inputs stay
    comfortably under the smallest VMEM budget across generations
    (v5e 16 MiB scoped default, v6e 32 MiB, v7x 64 MiB total VMEM).
    """
    if block_rows is None:
        target = (2 << 20) // max(row_bytes, 1)
        block_rows = max(_SUBLANES, min(max_rows, (target // _SUBLANES) * _SUBLANES))
    else:
        block_rows = max(_SUBLANES, (block_rows // _SUBLANES) * _SUBLANES)
    if n_rows <= block_rows:
        n_pad = _round_up(n_rows, _SUBLANES)
        block_rows = n_pad
    else:
        n_pad = _round_up(n_rows, block_rows)
    return n_pad, block_rows, n_pad // block_rows


def _pad_rows(x, n_pad, fill=0.0):
    n = x.shape[0]
    if n_pad == n:
        return x
    pad = [(0, n_pad - n)] + [(0, 0)] * (x.ndim - 1)
    return jnp.pad(x, pad, constant_values=fill)


def _prep_pair(pred, target, block_rows):
    """Returns (p2d, t2d, n_real, combine_lanes, block_rows, grid).

    1-D inputs are lane-packed to (rows, 128) (zero-padded); padded entries
    contribute 0 to every accumulated moment and the real count is used in the
    finalize step.  2-D inputs keep the (N, D) per-column semantics (axis=0
    reductions), padded with zero rows.
    """
    p = jnp.asarray(pred, jnp.float32)
    t = jnp.asarray(target, jnp.float32)
    if p.ndim == 1:
        n = p.shape[0]
        rows = pl.cdiv(n, _LANES)
        rows_pad, blk, grid = _row_tiling(rows, _LANES * 4, block_rows)
        total = rows_pad * _LANES
        p = jnp.pad(p, (0, total - n)).reshape(rows_pad, _LANES)
        t = jnp.pad(t, (0, total - n)).reshape(rows_pad, _LANES)
        return p, t, float(n), True, blk, grid
    n, d = p.shape
    n_pad, blk, grid = _row_tiling(n, d * 4, block_rows)
    return _pad_rows(p, n_pad), _pad_rows(t, n_pad), float(n), False, blk, grid


def _prep_weights(class_weights):
    # Hoisted out of the kernel: inf -> 0, normalize, pad to a lane-dense row.
    w = jnp.asarray(class_weights, jnp.float32).reshape(-1)
    w = jnp.where(jnp.isinf(w), 0.0, w)
    w = w / jnp.sum(w)
    num_classes = int(w.shape[0])
    # TODO(synk): >128 classes would need a tiled class accumulator.
    assert num_classes <= _LANES, 'class-count > 128 not supported'
    w_row = jnp.pad(w, (0, _LANES - num_classes)).reshape(1, _LANES)
    return w_row, num_classes


# ----------------------------------------------------------------------------
# Kernels
# ----------------------------------------------------------------------------
def _r2_kernel(p_ref, t_ref, o_ref, ssq_ref, st_ref, stt_ref, *,
               n_rows, combine_lanes):
    step = pl.program_id(0)

    @pl.when(step == 0)
    def _init():
        ssq_ref[...] = jnp.zeros_like(ssq_ref)
        st_ref[...] = jnp.zeros_like(st_ref)
        stt_ref[...] = jnp.zeros_like(stt_ref)

    p = p_ref[...]
    t = t_ref[...]
    ssq_ref[...] += jnp.sum(jnp.square(t - p), axis=0, keepdims=True)
    st_ref[...] += jnp.sum(t, axis=0, keepdims=True)
    stt_ref[...] += jnp.sum(t * t, axis=0, keepdims=True)

    @pl.when(step == pl.num_programs(0) - 1)
    def _finalize():
        ssq = ssq_ref[...]
        st = st_ref[...]
        stt = stt_ref[...]
        if combine_lanes:                      # 1-D input lane-packed: fold lanes
            ssq = jnp.sum(ssq, keepdims=True)
            st = jnp.sum(st, keepdims=True)
            stt = jnp.sum(stt, keepdims=True)
        true_var = stt - st * st * (1.0 / n_rows)
        o_ref[...] = 1.0 - ssq * pl.reciprocal(true_var, approx=False)


def _pearson_kernel(p_ref, t_ref, o_ref,
                    sp_ref, st_ref, spt_ref, spp_ref, stt_ref, *,
                    n_rows, combine_lanes):
    step = pl.program_id(0)

    @pl.when(step == 0)
    def _init():
        for r in (sp_ref, st_ref, spt_ref, spp_ref, stt_ref):
            r[...] = jnp.zeros_like(r)

    p = p_ref[...]
    t = t_ref[...]
    sp_ref[...] += jnp.sum(p, axis=0, keepdims=True)
    st_ref[...] += jnp.sum(t, axis=0, keepdims=True)
    spt_ref[...] += jnp.sum(p * t, axis=0, keepdims=True)
    spp_ref[...] += jnp.sum(p * p, axis=0, keepdims=True)
    stt_ref[...] += jnp.sum(t * t, axis=0, keepdims=True)

    @pl.when(step == pl.num_programs(0) - 1)
    def _finalize():
        inv_n = 1.0 / n_rows
        if combine_lanes:                      # single logical column across lanes
            sp = jnp.sum(sp_ref[...], keepdims=True)
            st = jnp.sum(st_ref[...], keepdims=True)
            spt = jnp.sum(spt_ref[...], keepdims=True)
            spp = jnp.sum(spp_ref[...], keepdims=True)
            stt = jnp.sum(stt_ref[...], keepdims=True)
            cov = spt - sp * st * inv_n
            p_ss = spp - sp * sp * inv_n       # ||p - mean(p)||^2
            t_ss = stt - st * st * inv_n
        else:
            sp = sp_ref[...]
            st = st_ref[...]
            cov = spt_ref[...] - sp * st * inv_n                        # (1, D)
            p_ss = jnp.sum(spp_ref[...] - sp * sp * inv_n, keepdims=True)
            t_ss = jnp.sum(stt_ref[...] - st * st * inv_n, keepdims=True)
        denom_sq = p_ss * t_ss
        # torch's host-side branch returns 1 on zero variance; the in-kernel
        # guard yields the same loss value (corr -> 0 -> loss 1) with no sync.
        corr = jnp.where(denom_sq > 0.0,
                         cov * lax.rsqrt(jnp.maximum(denom_sq, 1e-38)),
                         0.0)
        o_ref[...] = 1.0 - jnp.abs(corr)


def _logcosh_kernel(p_ref, t_ref, o_ref, acc_ref, *, n_elems):
    step = pl.program_id(0)

    @pl.when(step == 0)
    def _init():
        acc_ref[...] = jnp.zeros_like(acc_ref)

    ad = jnp.abs(p_ref[...] - t_ref[...])
    # stable: log(cosh(d)) = |d| + log(1 + exp(-2|d|)) - log(2)
    lc = ad + jnp.log(1.0 + jnp.exp(-2.0 * ad)) - _LOG2
    acc_ref[...] += jnp.sum(lc, keepdims=True)          # padded zeros add 0

    @pl.when(step == pl.num_programs(0) - 1)
    def _finalize():
        o_ref[...] = acc_ref[...] * (1.0 / n_elems)


def _accumulate_class_partials(per_sample, targets, num_classes, csum_ref, ccnt_ref):
    """Tileable replacement for weightLoss_DEPRECATED's gather/count logic.

    class_sum[c] += sum(per_sample[targets == c]); count[c] += #matches.
    Accumulators are lane-dense (1, 128) VMEM rows; everything is vector ops
    (a (1,1) reduction broadcast onto a one-hot lane row).
    Padded entries carry target = -1 and therefore match no class.
    """
    tgt_i = targets.astype(jnp.int32)                    # torch: targets.int()
    lane_iota = lax.broadcasted_iota(jnp.int32, (1, _LANES), 1)
    for c in range(num_classes):                         # static, small C
        m = (tgt_i == c).astype(jnp.float32)
        onehot = (lane_iota == c).astype(jnp.float32)
        csum_ref[...] += jnp.sum(m * per_sample, keepdims=True) * onehot
        ccnt_ref[...] += jnp.sum(m, keepdims=True) * onehot


def _weighted_finalize(csum_ref, ccnt_ref, w_row, o_ref):
    # final = sum_c class_sum[c] * w[c] / max(count[c], 1); empty classes give 0.
    cs = csum_ref[...]
    cc = ccnt_ref[...]
    contrib = cs * w_row * pl.reciprocal(jnp.maximum(cc, 1.0), approx=False)
    o_ref[...] = jnp.sum(contrib, keepdims=True)


def _weighted_mse_kernel(p_ref, t_ref, w_ref, o_ref, csum_ref, ccnt_ref, *,
                         num_classes):
    step = pl.program_id(0)

    @pl.when(step == 0)
    def _init():
        csum_ref[...] = jnp.zeros_like(csum_ref)
        ccnt_ref[...] = jnp.zeros_like(ccnt_ref)

    p = p_ref[...]                 # (block_rows, 128) lane-packed predictions
    t = t_ref[...]                 # (block_rows, 128) targets (also class ids)
    sq = jnp.square(p - t)
    _accumulate_class_partials(sq, t, num_classes, csum_ref, ccnt_ref)

    @pl.when(step == pl.num_programs(0) - 1)
    def _finalize():
        _weighted_finalize(csum_ref, ccnt_ref, w_ref[...], o_ref)


def _weighted_kldiv_kernel(p_ref, t_ref, tgt_ref, w_ref, o_ref,
                           csum_ref, ccnt_ref, *, num_classes):
    step = pl.program_id(0)

    @pl.when(step == 0)
    def _init():
        csum_ref[...] = jnp.zeros_like(csum_ref)
        ccnt_ref[...] = jnp.zeros_like(ccnt_ref)

    p = p_ref[...]                                   # (block_rows, D) log-probs
    t = jnp.clip(t_ref[...], 1e-20, 1.0)             # (block_rows, D) probs
    kl = jnp.sum(t * (jnp.log(t) - p), axis=1, keepdims=True)   # (block_rows, 1)
    _accumulate_class_partials(kl, tgt_ref[...], num_classes, csum_ref, ccnt_ref)

    @pl.when(step == pl.num_programs(0) - 1)
    def _finalize():
        _weighted_finalize(csum_ref, ccnt_ref, w_ref[...], o_ref)


# ----------------------------------------------------------------------------
# Wrappers
# ----------------------------------------------------------------------------
def r2_loss(predictedVals, trueLabels, *, block_rows=None):
    p, t, n_real, combine, blk, grid = _prep_pair(predictedVals, trueLabels, block_rows)
    d = p.shape[1]
    out_cols = 1 if combine else d
    out = pl.pallas_call(
        functools.partial(_r2_kernel, n_rows=n_real, combine_lanes=combine),
        out_shape=jax.ShapeDtypeStruct((1, out_cols), jnp.float32),
        grid=(grid,),
        in_specs=[pl.BlockSpec((blk, d), lambda i: (i, 0)),
                  pl.BlockSpec((blk, d), lambda i: (i, 0))],
        out_specs=pl.BlockSpec((1, out_cols), lambda i: (0, 0)),
        scratch_shapes=[pltpu.VMEM((1, d), jnp.float32),
                        pltpu.VMEM((1, d), jnp.float32),
                        pltpu.VMEM((1, d), jnp.float32)],
        compiler_params=_PARAMS,
    )(p, t)
    return out[0, 0] if combine else out[0]


def pearson_loss(predictedVals, trueVals, *, block_rows=None):
    p, t, n_real, combine, blk, grid = _prep_pair(predictedVals, trueVals, block_rows)
    d = p.shape[1]
    out_cols = 1 if combine else d
    out = pl.pallas_call(
        functools.partial(_pearson_kernel, n_rows=n_real, combine_lanes=combine),
        out_shape=jax.ShapeDtypeStruct((1, out_cols), jnp.float32),
        grid=(grid,),
        in_specs=[pl.BlockSpec((blk, d), lambda i: (i, 0)),
                  pl.BlockSpec((blk, d), lambda i: (i, 0))],
        out_specs=pl.BlockSpec((1, out_cols), lambda i: (0, 0)),
        scratch_shapes=[pltpu.VMEM((1, d), jnp.float32),
                        pltpu.VMEM((1, d), jnp.float32),
                        pltpu.VMEM((1, d), jnp.float32),
                        pltpu.VMEM((1, d), jnp.float32),
                        pltpu.VMEM((1, d), jnp.float32)],
        compiler_params=_PARAMS,
    )(p, t)
    return out[0, 0] if combine else out[0]


def logcosh_loss(predictedVals, targetVals, *, block_rows=None):
    p, t, n_real, combine, blk, grid = _prep_pair(predictedVals, targetVals, block_rows)
    d = p.shape[1]
    n_elems = n_real if combine else n_real * d
    out = pl.pallas_call(
        functools.partial(_logcosh_kernel, n_elems=float(n_elems)),
        out_shape=jax.ShapeDtypeStruct((1, 1), jnp.float32),
        grid=(grid,),
        in_specs=[pl.BlockSpec((blk, d), lambda i: (i, 0)),
                  pl.BlockSpec((blk, d), lambda i: (i, 0))],
        out_specs=pl.BlockSpec((1, 1), lambda i: (0, 0)),
        scratch_shapes=[pltpu.VMEM((1, 1), jnp.float32)],
        compiler_params=_PARAMS,
    )(p, t)
    return out[0, 0]


def weighted_mse_loss(predictions, targets, class_weights, *, block_rows=None):
    p = jnp.asarray(predictions, jnp.float32).reshape(-1)
    t = jnp.asarray(targets, jnp.float32).reshape(-1)
    assert p.shape == t.shape, 'Shapes of predictions and targets must match'
    w_row, num_classes = _prep_weights(class_weights)
    n = p.shape[0]
    rows = pl.cdiv(n, _LANES)
    rows_pad, blk, grid = _row_tiling(rows, _LANES * 4, block_rows)
    total = rows_pad * _LANES
    # Lane-dense packing; padded targets = -1 match no class => excluded.
    p2 = jnp.pad(p, (0, total - n)).reshape(rows_pad, _LANES)
    t2 = jnp.pad(t, (0, total - n), constant_values=-1.0).reshape(rows_pad, _LANES)
    out = pl.pallas_call(
        functools.partial(_weighted_mse_kernel, num_classes=num_classes),
        out_shape=jax.ShapeDtypeStruct((1, 1), jnp.float32),
        grid=(grid,),
        in_specs=[pl.BlockSpec((blk, _LANES), lambda i: (i, 0)),
                  pl.BlockSpec((blk, _LANES), lambda i: (i, 0)),
                  pl.BlockSpec((1, _LANES), lambda i: (0, 0))],
        out_specs=pl.BlockSpec((1, 1), lambda i: (0, 0)),
        scratch_shapes=[pltpu.VMEM((1, _LANES), jnp.float32),
                        pltpu.VMEM((1, _LANES), jnp.float32)],
        compiler_params=_PARAMS,
    )(p2, t2, w_row)
    return out[0, 0]


def weighted_kldiv_loss(predictedDist, trueDist, targets, class_weights, *, block_rows=None):
    p = jnp.asarray(predictedDist, jnp.float32)
    t = jnp.asarray(trueDist, jnp.float32)
    assert p.ndim == 2 and p.shape == t.shape
    tgt = jnp.asarray(targets, jnp.float32).reshape(-1, 1)   # tiny vs (N, D) dists
    w_row, num_classes = _prep_weights(class_weights)
    n, d = p.shape
    n_pad, blk, grid = _row_tiling(n, d * 4, block_rows)
    p = _pad_rows(p, n_pad)
    t = _pad_rows(t, n_pad)
    tgt = _pad_rows(tgt, n_pad, fill=-1.0)                   # padded rows: no class
    out = pl.pallas_call(
        functools.partial(_weighted_kldiv_kernel, num_classes=num_classes),
        out_shape=jax.ShapeDtypeStruct((1, 1), jnp.float32),
        grid=(grid,),
        in_specs=[pl.BlockSpec((blk, d), lambda i: (i, 0)),
                  pl.BlockSpec((blk, d), lambda i: (i, 0)),
                  pl.BlockSpec((blk, 1), lambda i: (i, 0)),
                  pl.BlockSpec((1, _LANES), lambda i: (0, 0))],
        out_specs=pl.BlockSpec((1, 1), lambda i: (0, 0)),
        scratch_shapes=[pltpu.VMEM((1, _LANES), jnp.float32),
                        pltpu.VMEM((1, _LANES), jnp.float32)],
        compiler_params=_PARAMS,
    )(p, t, tgt, w_row)
    return out[0, 0]


class CustomLossMethodsPallas:
    """JAX/Pallas port of customLossMethods (forward pass only)."""

    _SUPPORTED = ('weightedKLDiv', 'R2', 'pearson', 'LogCoshLoss', 'weightedMSE')

    def __init__(self, lossType, class_weights=None, debug_check_finite=False):
        self.lossType = lossType
        self.debug_check_finite = debug_check_finite
        self.class_weights = None
        if class_weights is not None:
            cw = jnp.asarray(class_weights, jnp.float32)
            cw = jnp.where(jnp.isinf(cw), 0.0, cw)
            cw = cw / jnp.sum(cw)
            self.class_weights = cw
            self.numClassesNormalized = int(jnp.sum(cw != jnp.inf))
        if lossType == 'diceLoss':
            # TODO(synk): diceLoss's weightLoss_DEPRECATED call in the source is
            # missing the `targets` argument (TypeError at runtime); not implemented.
            raise NotImplementedError('diceLoss forward is broken in the reference module')
        assert lossType in self._SUPPORTED, f'Unknown loss requested: {lossType}'

    def __call__(self, predictedVals, targetVals, class_weights=None, targets=None):
        if class_weights is None:
            class_weights = self.class_weights
        if self.lossType == 'weightedKLDiv':
            lossValue = weighted_kldiv_loss(predictedVals, targetVals, targets, class_weights)
        elif self.lossType == 'weightedMSE':
            lossValue = weighted_mse_loss(predictedVals, targetVals, class_weights)
        elif self.lossType == 'R2':
            lossValue = r2_loss(predictedVals, targetVals)
        elif self.lossType == 'pearson':
            lossValue = pearson_loss(predictedVals, targetVals)
        else:  # 'LogCoshLoss'
            lossValue = logcosh_loss(predictedVals, targetVals)
        if self.debug_check_finite:
            # torch asserts on NaN/Inf every forward; opt-in here because the
            # device->host sync would dominate these microsecond-scale kernels
            # and break jit/grad fusion.
            v = np.asarray(jax.device_get(lossValue))
            assert np.all(np.isfinite(v)), v
        return lossValue


# ----------------------------------------------------------------------------
# Demo / self-check
# ----------------------------------------------------------------------------
if __name__ == "__main__":
    key = jax.random.PRNGKey(0)
    keys = jax.random.split(key, 8)

    N, D, C = 40, 4, 3
    BLOCK_ROWS = 16        # small block -> 3 grid steps; exercises accumulation

    pred = jax.random.normal(keys[0], (N, D), jnp.float32)
    true = jax.random.normal(keys[1], (N, D), jnp.float32)

    # single-block (auto tiling) paths through the class API
    r2 = CustomLossMethodsPallas('R2')(pred, true)
    pe = CustomLossMethodsPallas('pearson')(pred, true)
    lc = CustomLossMethodsPallas('LogCoshLoss')(pred, true)

    # multi-block (gridded) paths
    r2_t = r2_loss(pred, true, block_rows=BLOCK_ROWS)
    pe_t = pearson_loss(pred, true, block_rows=BLOCK_ROWS)
    lc_t = logcosh_loss(pred, true, block_rows=BLOCK_ROWS)

    # 1-D (lane-packed) paths
    pred1 = jax.random.normal(keys[2], (37,), jnp.float32)
    true1 = jax.random.normal(keys[3], (37,), jnp.float32)
    r2_1d = r2_loss(pred1, true1)
    pe_1d = pearson_loss(pred1, true1)
    lc_1d = logcosh_loss(pred1, true1)

    # weighted losses
    class_weights = jnp.array([1.0, 2.0, 3.0], jnp.float32)
    targets_i = jax.random.randint(keys[4], (N,), 0, C)
    targets_f = targets_i.astype(jnp.float32)
    preds_1d = targets_f + 0.1 * jax.random.normal(keys[5], (N,), jnp.float32)
    mse = CustomLossMethodsPallas('weightedMSE', class_weights)(preds_1d, targets_f)

    log_pred = jax.nn.log_softmax(jax.random.normal(keys[6], (N, D), jnp.float32), axis=1)
    true_dist = jax.nn.softmax(jax.random.normal(keys[7], (N, D), jnp.float32), axis=1)
    kl = CustomLossMethodsPallas('weightedKLDiv', class_weights)(
        log_pred, true_dist, targets=targets_f)
    kl_t = weighted_kldiv_loss(log_pred, true_dist, targets_f, class_weights,
                               block_rows=BLOCK_ROWS)

    # ---- pure-JAX reference checks ----
    def ref_r2(p, t):
        ss = jnp.sum((t - p) ** 2, axis=0)
        tv = jnp.sum((t - t.mean(axis=0)) ** 2, axis=0)
        return 1.0 - ss / tv

    def ref_pearson(p, t):
        pd = p - p.mean(axis=0)
        td = t - t.mean(axis=0)
        cov = jnp.sum(pd * td, axis=0)
        return 1.0 - jnp.abs(cov / (jnp.linalg.norm(pd) * jnp.linalg.norm(td)))

    def ref_logcosh(p, t):
        return jnp.mean(jnp.log(jnp.cosh(p - t)))

    def ref_weight(losses, cw, tgt):
        w = cw / cw.sum()
        tgt_i = tgt.astype(jnp.int32)
        tw = w[tgt_i]
        counts = jnp.sum(tgt_i[:, None] == jnp.arange(cw.shape[0])[None, :],
                         axis=0).astype(jnp.float32)
        cnt = counts[tgt_i]
        return jnp.sum(losses * tw / jnp.where(cnt > 0, cnt, 1.0))

    tol = dict(rtol=1e-4, atol=1e-5)
    np.testing.assert_allclose(np.asarray(r2), np.asarray(ref_r2(pred, true)), **tol)
    np.testing.assert_allclose(np.asarray(r2_t), np.asarray(ref_r2(pred, true)), **tol)
    np.testing.assert_allclose(np.asarray(r2_1d), np.asarray(ref_r2(pred1, true1)), **tol)
    np.testing.assert_allclose(np.asarray(pe), np.asarray(ref_pearson(pred, true)), **tol)
    np.testing.assert_allclose(np.asarray(pe_t), np.asarray(ref_pearson(pred, true)), **tol)
    np.testing.assert_allclose(np.asarray(pe_1d), np.asarray(ref_pearson(pred1, true1)), **tol)
    np.testing.assert_allclose(np.asarray(lc), np.asarray(ref_logcosh(pred, true)), **tol)
    np.testing.assert_allclose(np.asarray(lc_t), np.asarray(ref_logcosh(pred, true)), **tol)
    np.testing.assert_allclose(np.asarray(lc_1d), np.asarray(ref_logcosh(pred1, true1)), **tol)

    ref_mse = ref_weight((preds_1d - targets_f) ** 2, class_weights, targets_f)
    np.testing.assert_allclose(np.asarray(mse), np.asarray(ref_mse), **tol)

    tcl = jnp.clip(true_dist, 1e-20, 1.0)
    ref_kl = ref_weight(jnp.sum(tcl * (jnp.log(tcl) - log_pred), axis=1),
                        class_weights, targets_f)
    np.testing.assert_allclose(np.asarray(kl), np.asarray(ref_kl), **tol)
    np.testing.assert_allclose(np.asarray(kl_t), np.asarray(ref_kl), **tol)

    jax.block_until_ready((r2, pe, lc, r2_t, pe_t, lc_t, r2_1d, pe_1d, lc_1d, mse, kl, kl_t))
    print("KERNEL_OK")
</pallas_src>

<mosaic_0001>
module attributes {stable_mosaic.version = 11 : i64} {
  func.func @_r2_kernel(%arg0: i32, %arg1: memref<40x4xf32, #tpu.memory_space<vmem>>, %arg2: memref<40x4xf32, #tpu.memory_space<vmem>>, %arg3: memref<1x4xf32, #tpu.memory_space<vmem>>, %arg4: memref<1x4xf32, #tpu.memory_space<vmem>>, %arg5: memref<1x4xf32, #tpu.memory_space<vmem>>, %arg6: memref<1x4xf32, #tpu.memory_space<vmem>>) attributes {dimension_semantics = [#tpu.dimension_semantics<arbitrary>], iteration_bounds = array<i64: 1>, scalar_prefetch = 0 : i64, scratch_operands = 3 : i64, tpu.core_type = #tpu.core_type<tc>, window_params = [{transform_indices = @transform_0, window_bounds = array<i64: 40, 4>}, {transform_indices = @transform_1, window_bounds = array<i64: 40, 4>}, {pipeline_mode = #tpu.pipeline_mode<synchronous>, transform_indices = @transform_2, window_bounds = array<i64: 1, 4>}]} {
    %c0_i32 = arith.constant 0 : i32
    %0 = arith.cmpi eq, %arg0, %c0_i32 : i32
    %1 = arith.extui %0 : i1 to i32
    %c0_i32_0 = arith.constant 0 : i32
    %2 = arith.cmpi ne, %1, %c0_i32_0 : i32
    scf.if %2 {
      %cst_20 = arith.constant 0.000000e+00 : f32
      %26 = vector.broadcast %cst_20 : f32 to vector<1x4xf32>
      %c0_21 = arith.constant 0 : index
      %c0_22 = arith.constant 0 : index
      %27 = vector.load %arg4[%c0_21, %c0_22] : memref<1x4xf32, #tpu.memory_space<vmem>>, vector<1x4xf32>
      tpu.vector_store %arg4[%c0_21, %c0_22], %26 {strides = array<i32>} : memref<1x4xf32, #tpu.memory_space<vmem>>, vector<1x4xf32>,
      %cst_23 = arith.constant 0.000000e+00 : f32
      %28 = vector.broadcast %cst_23 : f32 to vector<1x4xf32>
      %c0_24 = arith.constant 0 : index
      %c0_25 = arith.constant 0 : index
      %29 = vector.load %arg5[%c0_24, %c0_25] : memref<1x4xf32, #tpu.memory_space<vmem>>, vector<1x4xf32>
      tpu.vector_store %arg5[%c0_24, %c0_25], %28 {strides = array<i32>} : memref<1x4xf32, #tpu.memory_space<vmem>>, vector<1x4xf32>,
      %cst_26 = arith.constant 0.000000e+00 : f32
      %30 = vector.broadcast %cst_26 : f32 to vector<1x4xf32>
      %c0_27 = arith.constant 0 : index
      %c0_28 = arith.constant 0 : index
      %31 = vector.load %arg6[%c0_27, %c0_28] : memref<1x4xf32, #tpu.memory_space<vmem>>, vector<1x4xf32>
      tpu.vector_store %arg6[%c0_27, %c0_28], %30 {strides = array<i32>} : memref<1x4xf32, #tpu.memory_space<vmem>>, vector<1x4xf32>,
    } else {
    }
    %c0 = arith.constant 0 : index
    %c0_1 = arith.constant 0 : index
    %3 = vector.load %arg1[%c0, %c0_1] : memref<40x4xf32, #tpu.memory_space<vmem>>, vector<40x4xf32>
    %c0_2 = arith.constant 0 : index
    %c0_3 = arith.constant 0 : index
    %4 = vector.load %arg2[%c0_2, %c0_3] : memref<40x4xf32, #tpu.memory_space<vmem>>, vector<40x4xf32>
    %c0_4 = arith.constant 0 : index
    %c0_5 = arith.constant 0 : index
    %5 = vector.load %arg4[%c0_4, %c0_5] : memref<1x4xf32, #tpu.memory_space<vmem>>, vector<1x4xf32>
    %6 = arith.subf %4, %3 : vector<40x4xf32>
    %7 = arith.mulf %6, %6 : vector<40x4xf32>
    %cst = arith.constant dense<0.000000e+00> : vector<4xf32>
    %8 = vector.multi_reduction <add>, %7, %cst [0] : vector<40x4xf32> to vector<4xf32>
    %9 = vector.shape_cast %8 : vector<4xf32> to vector<1x4xf32>
    %10 = arith.addf %5, %9 : vector<1x4xf32>
    %c0_6 = arith.constant 0 : index
    %c0_7 = arith.constant 0 : index
    %11 = vector.load %arg4[%c0_6, %c0_7] : memref<1x4xf32, #tpu.memory_space<vmem>>, vector<1x4xf32>
    tpu.vector_store %arg4[%c0_6, %c0_7], %10 {strides = array<i32>} : memref<1x4xf32, #tpu.memory_space<vmem>>, vector<1x4xf32>,
    %c0_8 = arith.constant 0 : index
    %c0_9 = arith.constant 0 : index
    %12 = vector.load %arg5[%c0_8, %c0_9] : memref<1x4xf32, #tpu.memory_space<vmem>>, vector<1x4xf32>
    %cst_10 = arith.constant dense<0.000000e+00> : vector<4xf32>
    %13 = vector.multi_reduction <add>, %4, %cst_10 [0] : vector<40x4xf32> to vector<4xf32>
    %14 = vector.shape_cast %13 : vector<4xf32> to vector<1x4xf32>
    %15 = arith.addf %12, %14 : vector<1x4xf32>
    %c0_11 = arith.constant 0 : index
    %c0_12 = arith.constant 0 : index
    %16 = vector.load %arg5[%c0_11, %c0_12] : memref<1x4xf32, #tpu.memory_space<vmem>>, vector<1x4xf32>
    tpu.vector_store %arg5[%c0_11, %c0_12], %15 {strides = array<i32>} : memref<1x4xf32, #tpu.memory_space<vmem>>, vector<1x4xf32>,
    %c0_13 = arith.constant 0 : index
    %c0_14 = arith.constant 0 : index
    %17 = vector.load %arg6[%c0_13, %c0_14] : memref<1x4xf32, #tpu.memory_space<vmem>>, vector<1x4xf32>
    %18 = arith.mulf %4, %4 : vector<40x4xf32>
    %cst_15 = arith.constant dense<0.000000e+00> : vector<4xf32>
    %19 = vector.multi_reduction <add>, %18, %cst_15 [0] : vector<40x4xf32> to vector<4xf32>
    %20 = vector.shape_cast %19 : vector<4xf32> to vector<1x4xf32>
    %21 = arith.addf %17, %20 : vector<1x4xf32>
    %c0_16 = arith.constant 0 : index
    %c0_17 = arith.constant 0 : index
    %22 = vector.load %arg6[%c0_16, %c0_17] : memref<1x4xf32, #tpu.memory_space<vmem>>, vector<1x4xf32>
    tpu.vector_store %arg6[%c0_16, %c0_17], %21 {strides = array<i32>} : memref<1x4xf32, #tpu.memory_space<vmem>>, vector<1x4xf32>,
    %c0_i32_18 = arith.constant 0 : i32
    %23 = arith.cmpi eq, %arg0, %c0_i32_18 : i32
    %24 = arith.extui %23 : i1 to i32
    %c0_i32_19 = arith.constant 0 : i32
    %25 = arith.cmpi ne, %24, %c0_i32_19 : i32
    scf.if %25 {
      %c0_20 = arith.constant 0 : index
      %c0_21 = arith.constant 0 : index
      %26 = vector.load %arg4[%c0_20, %c0_21] : memref<1x4xf32, #tpu.memory_space<vmem>>, vector<1x4xf32>
      %c0_22 = arith.constant 0 : index
      %c0_23 = arith.constant 0 : index
      %27 = vector.load %arg5[%c0_22, %c0_23] : memref<1x4xf32, #tpu.memory_space<vmem>>, vector<1x4xf32>
      %c0_24 = arith.constant 0 : index
      %c0_25 = arith.constant 0 : index
      %28 = vector.load %arg6[%c0_24, %c0_25] : memref<1x4xf32, #tpu.memory_space<vmem>>, vector<1x4xf32>
      %29 = arith.mulf %27, %27 : vector<1x4xf32>
      %cst_26 = arith.constant 2.500000e-02 : f32
      %30 = vector.broadcast %cst_26 : f32 to vector<1x4xf32>
      %31 = arith.mulf %29, %30 : vector<1x4xf32>
      %32 = arith.subf %28, %31 : vector<1x4xf32>
      %33 = tpu.reciprocal %32 : vector<1x4xf32> -> vector<1x4xf32>
      %34 = arith.mulf %26, %33 : vector<1x4xf32>
      %cst_27 = arith.constant 1.000000e+00 : f32
      %35 = vector.broadcast %cst_27 : f32 to vector<1x4xf32>
      %36 = arith.subf %35, %34 : vector<1x4xf32>
      %c0_28 = arith.constant 0 : index
      %c0_29 = arith.constant 0 : index
      %37 = vector.load %arg3[%c0_28, %c0_29] : memref<1x4xf32, #tpu.memory_space<vmem>>, vector<1x4xf32>
      tpu.vector_store %arg3[%c0_28, %c0_29], %36 {strides = array<i32>} : memref<1x4xf32, #tpu.memory_space<vmem>>, vector<1x4xf32>,
    } else {
    }
    return
  }
  func.func @transform_0(%arg0: i32) -> (i32, i32) {
    %c0_i32 = arith.constant 0 : i32
    %c0_i32_0 = arith.constant 0 : i32
    return %arg0, %c0_i32 : i32, i32
  }
  func.func @transform_1(%arg0: i32) -> (i32, i32) {
    %c0_i32 = arith.constant 0 : i32
    %c0_i32_0 = arith.constant 0 : i32
    return %arg0, %c0_i32 : i32, i32
  }
  func.func @transform_2(%arg0: i32) -> (i32, i32) {
    %c0_i32 = arith.constant 0 : i32
    %c0_i32_0 = arith.constant 0 : i32
    %c0_i32_1 = arith.constant 0 : i32
    return %c0_i32, %c0_i32_0 : i32, i32
  }
}

</mosaic_0001>

<bundles_post_ra>
// kernel: tpu_custom_call.1
= control target key start
LH: loop header
LB: loop body
LE: loop exit
PB: predicated region body
PF: predicated region fallthrough
CT: control target
= control target key end

     0   :  { %vm16_vm0 = vcmask 24576   ;;  %vm41_vm1 = vcmask 31744   ;;  %v156_v3 = vmov 0.0   ;;  %s237_s0 = inlined_call_operand.vmem [shape: f32[40,4], index: 0, kind: input, shape index: {}]   ;;  %s238_s1 = inlined_call_operand.vmem [shape: f32[40,4], index: 1, kind: input, shape index: {}]   ;;  %s239_s2 = inlined_call_operand.hbm [shape: f32[1,4], index: 2, kind: output, shape index: {}]  }
   0x1   :  { %v25_v0 = vld [vmem:[%s238_s1] sm:$0xff]  ;;  %v26_v1 = vld [vmem:[%s238_s1 + $0x8] sm:$0xff]  ;;  %v27_v2 = vld [vmem:[%s238_s1 + $0x10] sm:$0xff]  ;;  %18 = vst.msk [vmem:[#allocation3] sm:$0x1] %vm16_vm0, %v156_v3 }
   0x2   :  { %17 = vst.msk [vmem:[#allocation2] sm:$0x1] %vm16_vm0, %v156_v3  ;;  %19 = vst.msk [vmem:[#allocation4] sm:$0x1] %vm16_vm0, %v156_v3  ;;  %v28_v4 = vld [vmem:[%s238_s1 + $0x18] sm:$0xff]  ;;  %v61_v5 = vsel %vm41_vm1, %v25_v0, 0.0  ;;  %v79_v8 = vmul.f32 %v25_v0, %v25_v0  ;;  %v80_v13 = vmul.f32 %v26_v1, %v26_v1  ;;  %v81_v16 = vmul.f32 %v27_v2, %v27_v2 }
   0x3   :  { %v62_v6 = vsel %vm41_vm1, %v26_v1, 0.0  ;;  %v64_v7 = vsel %vm41_vm1, %v27_v2, 0.0  ;;  %v20_v9 = vld [vmem:[%s237_s0] sm:$0xff]  ;;  %v66_v12 = vsel %vm41_vm1, %v28_v4, 0.0  ;;  %v21_v14 = vld [vmem:[%s237_s0 + $0x8] sm:$0xff]  ;;  %v22_v15 = vld [vmem:[%s237_s0 + $0x10] sm:$0xff]  ;;  %v82_v17 = vmul.f32 %v28_v4, %v28_v4 }
   0x4   :  { %v29_v10 = vld [vmem:[%s238_s1 + $0x20] sm:$0xff]  ;;  %v63_v11 = vadd.f32 %v62_v6, %v61_v5  ;;  %v84_v19 = vsel %vm41_vm1, %v79_v8, 0.0  ;;  %v23_v20 = vld [vmem:[%s237_s0 + $0x18] sm:$0xff] }
   0x5   :  { %v83_v18 = vmul.f32 %v29_v10, %v29_v10  ;;  %v24_v21 = vld [vmem:[%s237_s0 + $0x20] sm:$0xff] }
   0x6   :  { %7 = vsyncpa [#allocation6], 0  ;;  %v65_v22 = vadd.f32 %v64_v7, %v63_v11  ;;  %v85_v23 = vsel %vm41_vm1, %v80_v13, 0.0  ;;  %v31_v24 = vsub.f32 %v25_v0, %v20_v9  ;;  %v32_v25 = vsub.f32 %v26_v1, %v21_v14  ;;  %s157_s0 = smov [#allocation5]  }
   0x7   :  { %v68_v26 = vsel %vm41_vm1, %v29_v10, 0.0  ;;  %v86_v27 = vadd.f32 %v85_v23, %v84_v19  ;;  %v87_v28 = vsel %vm41_vm1, %v81_v16, 0.0  ;;  %v89_v29 = vsel %vm41_vm1, %v82_v17, 0.0  ;;  %s120_s28 = sshll.u32 %s157_s0, 4  ;;  %s121_s28 = int_to_ptr.vmem [resolvable:$true] %s120_s28 }
   0x8   :  { %v67_v30 = vadd.f32 %v66_v12, %v65_v22  ;;  %v33_v31 = vsub.f32 %v27_v2, %v22_v15  ;;  %v34_v32 = vsub.f32 %v28_v4, %v23_v20  ;;  %v35_v33 = vsub.f32 %v29_v10, %v24_v21  ;;  %v60_v62 = vld [vmem:[#allocation3] sm:$0x1]  ;;  %s132_s29 = scalar_lea.vmem %s121_s28, 16  ;;  %s136_s30 = scalar_lea.vmem %s121_s28, 32 }
   0x9   :  { %v88_v34 = vadd.f32 %v87_v28, %v86_v27  ;;  %v36_v35 = vmul.f32 %v31_v24, %v31_v24  ;;  %v37_v36 = vmul.f32 %v32_v25, %v32_v25  ;;  %v91_v38 = vsel %vm41_vm1, %v83_v18, 0.0  ;;  %v78_v4 = vld [vmem:[#allocation4] sm:$0x1]  ;;  %v30_v10 = vld [vmem:[#allocation2] sm:$0x1]  ;;  %p133_p0 = scmp.ne.s32.totalorder %s121_s28, %s132_s29  ;;  %p137_p1 = scmp.lt.s32.totalorder %s121_s28, %s121_s28 }
   0xa   :  { %v69_v37 = vadd.f32 %v68_v26, %v67_v30  ;;  %v38_v39 = vmul.f32 %v33_v31, %v33_v31  ;;  %v39_v40 = vmul.f32 %v34_v32, %v34_v32  ;;  %v40_v42 = vmul.f32 %v35_v33, %v35_v33  ;;  %p138_p2 = scmp.lt.s32.totalorder %s136_s30, %s132_s29 }
   0xb   :  { %v90_v41 = vadd.f32 %v89_v29, %v88_v34  ;;  %v42_v43 = vsel %vm41_vm1, %v36_v35, 0.0  ;;  %v43_v44 = vsel %vm41_vm1, %v37_v36, 0.0 }
   0xc   :  { %v70_v45 = vrot.slane %v69_v37, 4  ;;  %v44_v46 = vadd.f32 %v43_v44, %v42_v43  ;;  %v45_v47 = vsel %vm41_vm1, %v38_v39, 0.0  ;;  %v47_v49 = vsel %vm41_vm1, %v39_v40, 0.0  ;;  %p139_p3 = por %p138_p2, %p137_p1 }
   0xd   :  { %v92_v48 = vadd.f32 %v91_v38, %v90_v41  ;;  %v49_v53 = vsel %vm41_vm1, %v40_v42, 0.0 }
   0xe   :  { %v71_v50 = vadd.f32 %v70_v45, %v69_v37  ;;  %v46_v51 = vadd.f32 %v45_v47, %v44_v46  ;;  %p140_p4 = pnand %p139_p3, %p133_p0 }
   0xf   :  { %v93_v52 = vrot.slane %v92_v48, 4 }
  0x10   :  { %v72_v54 = vrot.slane %v71_v50, 2  ;;  %v48_v55 = vadd.f32 %v47_v49, %v46_v51 }
  0x11   :  { %v94_v56 = vadd.f32 %v93_v52, %v92_v48 }
  0x12   :  { %v73_v57 = vadd.f32 %v72_v54, %v71_v50  ;;  %v50_v58 = vadd.f32 %v49_v53, %v48_v55 }
  0x13   :  { %v95_v59 = vrot.slane %v94_v56, 2 }
  0x14   :  { %v74_v60 = vrot.slane %v73_v57, 1  ;;  %v51_v61 = vrot.slane %v50_v58, 4 }
  0x15   :  { %v96_v63 = vadd.f32 %v95_v59, %v94_v56 }
  0x16   :  { %v75_v0 = vadd.f32 %v74_v60, %v73_v57  ;;  %v52_v1 = vadd.f32 %v51_v61, %v50_v58 }
  0x17   :  { %v97_v2 = vrot.slane %v96_v63, 1 }
  0x18   :  { %v76_v3 = vadd.f32 %v75_v0, %v60_v62  ;;  %v53_v5 = vrot.slane %v52_v1, 2 }
  0x19   :  { %v98_v6 = vadd.f32 %v97_v2, %v96_v63 }
  0x1a   :  { %77 = vst.msk [vmem:[#allocation3] sm:$0x1] %vm16_vm0, %v76_v3  ;;  %v54_v7 = vadd.f32 %v53_v5, %v52_v1 }
  0x1b   :  { %v99_v8 = vadd.f32 %v98_v6, %v78_v4 }
  0x1c   :  { %v55_v9 = vrot.slane %v54_v7, 1 }
  0x1d   :  { %100 = vst.msk [vmem:[#allocation4] sm:$0x1] %vm16_vm0, %v99_v8 }
  0x1e   :  { %v56_v11 = vadd.f32 %v55_v9, %v54_v7 }
  0x20   :  { %v57_v12 = vadd.f32 %v56_v11, %v30_v10 }
  0x21   :  { %v105_v13 = vld [vmem:[#allocation3] sm:$0x1] }
  0x22   :  { %59 = vst.msk [vmem:[#allocation2] sm:$0x1] %vm16_vm0, %v57_v12  ;;  %v107_v14 = vmul.f32 %v105_v13, %v105_v13 }
  0x24   :  { %v106_v15 = vld [vmem:[#allocation4] sm:$0x1]  ;;  %v108_v16 = vmul.f32 0.025, %v107_v14 }
  0x26   :  { %v109_v17 = vsub.f32 %v106_v15, %v108_v16 }
  0x28   :  { %130 = vrcp.f32 %v109_v17 }
  0x29   :  { %v104_v18 = vld [vmem:[#allocation2] sm:$0x1] }
  0x32   :  { %v131_v19 = vpop.eup %130 }
  0x33   :  { %v111_v20 = vmul.f32 %v131_v19, %v104_v18 }
  0x35   :  { %v112_v21 = vsub.f32 1.0, %v111_v20 }
  0x37   :  { %113 = vst.msk [vmem:[#allocation5] sm:$0x1] %vm16_vm0, %v112_v21 }
  0x38   :  { %143 = shalt.err (!%p140_p4)
}
  0x39   :  { %s144_s5 = scalar_lea.hbm %s239_s2, 16 }
  0x3a   :  { %p145_p5 = scmp.ne.s32.totalorder %s239_s2, %s144_s5  ;;  %p148_p6 = scmp.lt.u32.totalorder %s144_s5, %s239_s2 }
  0x3c   :  { %p150_p7 = pnand %p148_p6, %p145_p5 }
  0x3e   :  { %153 = shalt.err (!%p150_p7)
}
  0x3f   :  { %123 = dma.vmem_to_hbm [thread:$0]  %s121_s28, 16, %s239_s2, [#allocation6]  }
  0x40   :  { %154 = dma.done.wait [#allocation6], 16  }
  0x41   :  { %155 = vsyncadd [#allocation6], 4294967280 }
  0x42   :  { %127 = vsyncpa [#allocation6], 1 }

</bundles_post_ra>
